<compile_context>
chip_gen: v7x
topology: tpu7x:2x2x1
jax: 0.10.0
libtpu: 0.0.40
codegen_flags: <defaults>
</compile_context>

<pallas_src>
import jax
import jax.numpy as jnp
from jax import lax
from jax.experimental import pallas as pl
from jax.experimental.pallas import tpu as pltpu

IN_DIM = 4
HIDDEN_DIM = 4000
HIDDEN_PAD = 4096     # next multiple of 128 -> every lane tile is full
OUT_DIM = 1
W2_ROWS = 8           # pad W2's single output row to a full sublane tile (8 rows)
TB_MAX = 256          # batch tile; sweep 256-512 (cap ~512 on v7x's 64 MiB VMEM)

# rhs-transposed matmul dims: (M, K) x (N, K) -> (M, N)  (same "NT" dims as q @ k^T)
NT_DIM_NUMBERS = (((1,), (1,)), ((), ()))


def ann1_kernel(x_ref, w1_ref, b1_ref, w2_ref, b2_ref, o_ref):
    # x: (TB, 4)  w1: (4, 4096)  b1: (1, 4096)  w2: (8, 4096)  b2: (1, 1)  o: (1, TB)
    # Layer 1 on the MXU (K=4 wastes the array, but the vex slot was idle while the
    # VALU slot was the saturating unit; f32 path keeps full precision).
    h = jnp.dot(x_ref[...], w1_ref[...], preferred_element_type=jnp.float32)   # (TB, 4096)
    h = jnp.maximum(h + b1_ref[...], 0.0)                                      # VPU: bias+relu
    # Layer 2 on the MXU, rhs-transposed: y8[n, b] = sum_k w2[n, k] * h[b, k].
    # Row 0 of w2 is the real weight row (rows 1..7 zero); the result is already
    # lane-dense along the batch axis.
    y8 = lax.dot_general(w2_ref[...], h, NT_DIM_NUMBERS,
                         preferred_element_type=jnp.float32)                   # (8, TB)
    o_ref[...] = (y8[0:1, :] + b2_ref[...]).astype(o_ref.dtype)                # (1, TB)


def _round_up(a, m):
    return ((a + m - 1) // m) * m


def prepare_params(w1, b1, w2, b2):
    """Pad/reshape the weights ONCE (cache the result across forward calls)."""
    pad_h = HIDDEN_PAD - HIDDEN_DIM
    w1_p = jnp.pad(w1, ((0, 0), (0, pad_h)))                                   # (4, 4096)
    b1_p = jnp.pad(b1, ((0, pad_h),)).reshape(1, HIDDEN_PAD)                   # (1, 4096)
    w2_p = jnp.pad(w2.reshape(1, HIDDEN_DIM),
                   ((0, W2_ROWS - 1), (0, pad_h)))                             # (8, 4096)
    b2_p = b2.reshape(1, OUT_DIM)                                              # (1, 1)
    return w1_p, b1_p, w2_p, b2_p


def ann1_forward(x, params):
    """x: (B, 4) f32, params = prepare_params(w1, b1, w2, b2). Returns (B, 1)."""
    w1_p, b1_p, w2_p, b2_p = params
    B = x.shape[0]

    # Adaptive batch tile: large batches use TB_MAX; small batches use one full tile
    # (rounded up to a sublane multiple) so we never pad B=8 up to 256.
    TB = min(TB_MAX, _round_up(B, 8))
    Bp = _round_up(B, TB)
    x_p = jnp.pad(x, ((0, Bp - B), (0, 0))) if Bp != B else x

    out = pl.pallas_call(
        ann1_kernel,
        out_shape=jax.ShapeDtypeStruct((1, Bp), jnp.float32),   # lane-dense output row
        grid=(Bp // TB,),
        in_specs=[
            pl.BlockSpec((TB, IN_DIM), lambda i: (i, 0)),            # x tile
            pl.BlockSpec((IN_DIM, HIDDEN_PAD), lambda i: (0, 0)),    # W1 resident
            pl.BlockSpec((1, HIDDEN_PAD), lambda i: (0, 0)),         # b1 resident
            pl.BlockSpec((W2_ROWS, HIDDEN_PAD), lambda i: (0, 0)),   # W2 slab resident
            pl.BlockSpec((1, OUT_DIM), lambda i: (0, 0)),            # b2 resident
        ],
        out_specs=pl.BlockSpec((1, TB), lambda i: (0, i)),
        compiler_params=pltpu.CompilerParams(
            # v7x note: use pltpu.CORE_PARALLEL / core_map if profiling shows one TC
            # doing all tiles; "parallel" is kept for portability to single-TC chips.
            dimension_semantics=("parallel",),
            vmem_limit_bytes=32 * 1024 * 1024,
        ),
    )(x_p, w1_p, b1_p, w2_p, b2_p)
    return out[0, :B].reshape(B, OUT_DIM)


def init_params(key):
    """Deterministic init mimicking PyTorch nn.Linear default U[-1/sqrt(fan_in), +]."""
    k1, k2, k3, k4 = jax.random.split(key, 4)
    bound1 = 1.0 / jnp.sqrt(jnp.float32(IN_DIM))
    bound2 = 1.0 / jnp.sqrt(jnp.float32(HIDDEN_DIM))
    w1 = jax.random.uniform(k1, (IN_DIM, HIDDEN_DIM), jnp.float32, -bound1, bound1)
    b1 = jax.random.uniform(k2, (HIDDEN_DIM,), jnp.float32, -bound1, bound1)
    w2 = jax.random.uniform(k3, (HIDDEN_DIM, OUT_DIM), jnp.float32, -bound2, bound2)
    b2 = jax.random.uniform(k4, (OUT_DIM,), jnp.float32, -bound2, bound2)
    return w1, b1, w2, b2


# TODO(synk): partial_fit / SGD optimizer / MSELoss training path is not part of the
# forward pass and is not translated here.

if __name__ == "__main__":
    key = jax.random.PRNGKey(0)
    k_x, k_p = jax.random.split(key)

    B = 8  # small batch for the demo; large batches tile at TB_MAX=256
    x = jax.random.normal(k_x, (B, IN_DIM), jnp.float32)
    w1, b1, w2, b2 = init_params(k_p)

    params = prepare_params(w1, b1, w2, b2)        # pad/reshape weights once
    fwd = jax.jit(ann1_forward)
    out = jax.block_until_ready(fwd(x, params))

    # High-precision reference in plain JAX.
    h_ref = jnp.maximum(
        lax.dot(x, w1, precision=lax.Precision.HIGHEST) + b1, 0.0)
    ref = lax.dot(h_ref, w2, precision=lax.Precision.HIGHEST) + b2

    assert out.shape == (B, OUT_DIM)
    # 5e-3 tolerance leaves margin for the MXU f32 matmul pass rounding vs. the
    # HIGHEST-precision reference; real bugs produce O(0.1-1) errors.
    assert jnp.allclose(out, ref, atol=5e-3, rtol=5e-3), "mismatch vs reference"

    print("KERNEL_OK")
</pallas_src>

<mosaic_0001>
module attributes {stable_mosaic.version = 11 : i64} {
  func.func @ann1_kernel(%arg0: i32, %arg1: memref<8x4xf32, #tpu.memory_space<vmem>>, %arg2: memref<4x4096xf32, #tpu.memory_space<vmem>>, %arg3: memref<1x4096xf32, #tpu.memory_space<vmem>>, %arg4: memref<8x4096xf32, #tpu.memory_space<vmem>>, %arg5: memref<1x1xf32, #tpu.memory_space<vmem>>, %arg6: memref<1x8xf32, #tpu.memory_space<vmem>>) attributes {dimension_semantics = [#tpu.dimension_semantics<parallel>], iteration_bounds = array<i64: 1>, scalar_prefetch = 0 : i64, scratch_operands = 0 : i64, tpu.core_type = #tpu.core_type<tc>, window_params = [{transform_indices = @transform_0, window_bounds = array<i64: 8, 4>}, {pipeline_mode = #tpu.pipeline_mode<synchronous>, transform_indices = @transform_1, window_bounds = array<i64: 4, 4096>}, {pipeline_mode = #tpu.pipeline_mode<synchronous>, transform_indices = @transform_2, window_bounds = array<i64: 1, 4096>}, {pipeline_mode = #tpu.pipeline_mode<synchronous>, transform_indices = @transform_3, window_bounds = array<i64: 8, 4096>}, {pipeline_mode = #tpu.pipeline_mode<synchronous>, transform_indices = @transform_4, window_bounds = array<i64: 1, 1>}, {transform_indices = @transform_5, window_bounds = array<i64: 1, 8>}]} {
    %c0 = arith.constant 0 : index
    %c0_0 = arith.constant 0 : index
    %0 = vector.load %arg1[%c0, %c0_0] : memref<8x4xf32, #tpu.memory_space<vmem>>, vector<8x4xf32>
    %c0_1 = arith.constant 0 : index
    %c0_2 = arith.constant 0 : index
    %1 = vector.load %arg2[%c0_1, %c0_2] : memref<4x4096xf32, #tpu.memory_space<vmem>>, vector<4x4096xf32>
    %cst = arith.constant dense<0.000000e+00> : vector<8x4096xf32>
    %2 = tpu.matmul %0, %1, %cst {dimension_numbers = #tpu.dot_dimension_numbers<[1], [0], [0], [1], [0, 0, 1, 1], [], []>} : vector<8x4xf32>, vector<4x4096xf32>, vector<8x4096xf32> -> vector<8x4096xf32>
    %c0_3 = arith.constant 0 : index
    %c0_4 = arith.constant 0 : index
    %3 = vector.load %arg3[%c0_3, %c0_4] : memref<1x4096xf32, #tpu.memory_space<vmem>>, vector<1x4096xf32>
    %4 = vector.broadcast %3 : vector<1x4096xf32> to vector<8x4096xf32>
    %5 = arith.addf %2, %4 : vector<8x4096xf32>
    %cst_5 = arith.constant 0.000000e+00 : f32
    %6 = vector.broadcast %cst_5 : f32 to vector<8x4096xf32>
    %7 = arith.maximumf %5, %6 : vector<8x4096xf32>
    %c0_6 = arith.constant 0 : index
    %c0_7 = arith.constant 0 : index
    %8 = vector.load %arg4[%c0_6, %c0_7] : memref<8x4096xf32, #tpu.memory_space<vmem>>, vector<8x4096xf32>
    %cst_8 = arith.constant dense<0.000000e+00> : vector<8x8xf32>
    %9 = tpu.matmul %8, %7, %cst_8 {dimension_numbers = #tpu.dot_dimension_numbers<[1], [1], [0], [0], [0, 0, 1, 0], [], []>} : vector<8x4096xf32>, vector<8x4096xf32>, vector<8x8xf32> -> vector<8x8xf32>
    %10 = vector.extract_strided_slice %9 {offsets = [0, 0], sizes = [1, 8], strides = [1, 1]} : vector<8x8xf32> to vector<1x8xf32>
    %c0_9 = arith.constant 0 : index
    %c0_10 = arith.constant 0 : index
    %11 = vector.load %arg5[%c0_9, %c0_10] : memref<1x1xf32, #tpu.memory_space<vmem>>, vector<1x1xf32>
    %12 = vector.broadcast %11 : vector<1x1xf32> to vector<1x8xf32>
    %13 = arith.addf %10, %12 : vector<1x8xf32>
    %c0_11 = arith.constant 0 : index
    %c0_12 = arith.constant 0 : index
    %14 = vector.load %arg6[%c0_11, %c0_12] : memref<1x8xf32, #tpu.memory_space<vmem>>, vector<1x8xf32>
    tpu.vector_store %arg6[%c0_11, %c0_12], %13 {strides = array<i32>} : memref<1x8xf32, #tpu.memory_space<vmem>>, vector<1x8xf32>,
    return
  }
  func.func @transform_0(%arg0: i32) -> (i32, i32) {
    %c0_i32 = arith.constant 0 : i32
    %c0_i32_0 = arith.constant 0 : i32
    return %arg0, %c0_i32 : i32, i32
  }
  func.func @transform_1(%arg0: i32) -> (i32, i32) {
    %c0_i32 = arith.constant 0 : i32
    %c0_i32_0 = arith.constant 0 : i32
    %c0_i32_1 = arith.constant 0 : i32
    return %c0_i32, %c0_i32_0 : i32, i32
  }
  func.func @transform_2(%arg0: i32) -> (i32, i32) {
    %c0_i32 = arith.constant 0 : i32
    %c0_i32_0 = arith.constant 0 : i32
    %c0_i32_1 = arith.constant 0 : i32
    return %c0_i32, %c0_i32_0 : i32, i32
  }
  func.func @transform_3(%arg0: i32) -> (i32, i32) {
    %c0_i32 = arith.constant 0 : i32
    %c0_i32_0 = arith.constant 0 : i32
    %c0_i32_1 = arith.constant 0 : i32
    return %c0_i32, %c0_i32_0 : i32, i32
  }
  func.func @transform_4(%arg0: i32) -> (i32, i32) {
    %c0_i32 = arith.constant 0 : i32
    %c0_i32_0 = arith.constant 0 : i32
    %c0_i32_1 = arith.constant 0 : i32
    return %c0_i32, %c0_i32_0 : i32, i32
  }
  func.func @transform_5(%arg0: i32) -> (i32, i32) {
    %c0_i32 = arith.constant 0 : i32
    %c0_i32_0 = arith.constant 0 : i32
    return %c0_i32, %arg0 : i32, i32
  }
}

</mosaic_0001>

<bundles_post_ra>
// kernel: ann1_forward.1
= control target key start
LH: loop header
LB: loop body
LE: loop exit
PB: predicated region body
PF: predicated region fallthrough
CT: control target
= control target key end

     0   :  { %s3109_s0 = inlined_call_operand.vmem [shape: f32[8,4], index: 0, kind: input, shape index: {}]   ;;  %s3110_s1 = inlined_call_operand.hbm [shape: f32[4,4096], index: 1, kind: input, shape index: {}]   ;;  %s3111_s2 = inlined_call_operand.hbm [shape: f32[1,4096], index: 2, kind: input, shape index: {}]   ;;  %s3112_s3 = inlined_call_operand.hbm [shape: f32[8,4096], index: 3, kind: input, shape index: {}]   ;;  %s3113_s4 = inlined_call_operand.<no memory space> [shape: f32[1,1], index: 4, kind: input, shape index: {}]   ;;  %s3114_s5 = inlined_call_operand.hbm [shape: f32[1,8], index: 5, kind: output, shape index: {}]  }
   0x1   :  { %v10_v0 = vstv %s3113_s4 }
   0x2   :  { %11 = vst [vmem:[#allocation2] sm:$0x1] %v10_v0 }
   0x3   :  { %12 = vsyncpa [#allocation4], 0 }
   0x4   :  { %13 = vsyncpa [#allocation7], 0 }
   0x5   :  { %14 = vsyncpa [#allocation5], 0  ;;  %s2858_s20 = smov [#allocation6]   ;;  %s2859_s22 = smov [#allocation3]  }
   0x6   :  { %s33_s21 = sshll.u32 %s2858_s20, 4  ;;  %s23_s23 = sshll.u32 %s2859_s22, 4  ;;  %s34_s21 = int_to_ptr.vmem [resolvable:$true] %s33_s21  ;;  %s24_s23 = int_to_ptr.vmem [resolvable:$true] %s23_s23 }
   0x7   :  { %s2764_s26 = scalar_lea.hbm %s3111_s2, 512 }
   0x8   :  { %p2765_p0 = scmp.ne.s32.totalorder %s3111_s2, %s2764_s26  ;;  %p2768_p1 = scmp.lt.u32.totalorder %s2764_s26, %s3111_s2 }
   0xa   :  { %p2770_p2 = pnand %p2768_p1, %p2765_p0 }
   0xc   :  { %2773 = shalt.err (!%p2770_p2)
}
   0xd   :  { %s2774_s30 = scalar_lea.vmem %s34_s21, 512  ;;  %p2779_p4 = scmp.lt.s32.totalorder %s34_s21, %s34_s21 }
   0xe   :  { %p2775_p3 = scmp.ne.s32.totalorder %s34_s21, %s2774_s30  ;;  %p2780_p5 = scmp.lt.s32.totalorder %s2774_s30, %s2774_s30 }
  0x10   :  { %p2781_p6 = por %p2780_p5, %p2779_p4 }
  0x12   :  { %p2782_p7 = pnand %p2781_p6, %p2775_p3 }
  0x14   :  { %2785 = shalt.err (!%p2782_p7)
}
  0x15   :  { %36 = dma.hbm_to_vmem [thread:$0]  %s3111_s2, 512, %s34_s21, [#allocation7]  }
  0x16   :  { %s2786_s10 = scalar_lea.hbm %s3110_s1, 2048 }
  0x17   :  { %p2787_p8 = scmp.ne.s32.totalorder %s3110_s1, %s2786_s10  ;;  %p2790_p9 = scmp.lt.u32.totalorder %s2786_s10, %s3110_s1 }
  0x19   :  { %p2792_p10 = pnand %p2790_p9, %p2787_p8 }
  0x1b   :  { %2795 = shalt.err (!%p2792_p10)
}
  0x1c   :  { %s2796_s15 = scalar_lea.vmem %s24_s23, 2048  ;;  %p2801_p12 = scmp.lt.s32.totalorder %s24_s23, %s24_s23 }
  0x1d   :  { %p2797_p11 = scmp.ne.s32.totalorder %s24_s23, %s2796_s15  ;;  %p2802_p13 = scmp.lt.s32.totalorder %s2796_s15, %s2796_s15 }
  0x1f   :  { %p2803_p0 = por %p2802_p13, %p2801_p12 }
  0x21   :  { %p2804_p1 = pnand %p2803_p0, %p2797_p11 }
  0x23   :  { %2807 = shalt.err (!%p2804_p1)
}
  0x24   :  { %26 = dma.hbm_to_vmem [thread:$0]  %s3110_s1, 2048, %s24_s23, [#allocation4]  }
  0x25   :  { %s2860_s17 = smov [#allocation8]   ;;  %s2808_s21 = scalar_lea.hbm %s3112_s3, 4096 }
  0x26   :  { %s43_s18 = sshll.u32 %s2860_s17, 4  ;;  %p2809_p2 = scmp.ne.s32.totalorder %s3112_s3, %s2808_s21  ;;  %s44_s18 = int_to_ptr.vmem [resolvable:$true] %s43_s18 }
  0x27   :  { %p2812_p3 = scmp.lt.u32.totalorder %s2808_s21, %s3112_s3 }
  0x29   :  { %p2814_p4 = pnand %p2812_p3, %p2809_p2 }
  0x2b   :  { %2817 = shalt.err (!%p2814_p4)
}
  0x2c   :  { %s2818_s27 = scalar_lea.vmem %s44_s18, 4096  ;;  %p2823_p6 = scmp.lt.s32.totalorder %s44_s18, %s44_s18 }
  0x2d   :  { %p2819_p5 = scmp.ne.s32.totalorder %s44_s18, %s2818_s27  ;;  %p2824_p7 = scmp.lt.s32.totalorder %s2818_s27, %s2818_s27 }
  0x2f   :  { %p2825_p8 = por %p2824_p7, %p2823_p6 }
  0x31   :  { %p2826_p9 = pnand %p2825_p8, %p2819_p5 }
  0x33   :  { %2829 = shalt.err (!%p2826_p9)
}
  0x34   :  { %46 = dma.hbm_to_vmem [thread:$0]  %s3112_s3, 4096, %s44_s18, [#allocation7]  }
  0x35   :  { %2852 = dma.done.wait [#allocation4], 2048  }
  0x36   :  { %2853 = vsyncadd [#allocation4], 4294965248 }
  0x37   :  { %2854 = dma.done.wait [#allocation7], 4608  }
  0x38   :  { %2855 = vsyncadd [#allocation7], 4294962688  ;;  %v2861_v1 = vmov 0.0   ;;  %v59_v2 = vld [vmem:[#allocation3] sm:$0xff]  ;;  %vm279_vm0 = vcmask 1043456   ;;  %v60_v3 = vld [vmem:[#allocation3 + $0x8] sm:$0xff]  ;;  %v83_v39 = vlaneseq }
  0x39   :  { %408 = vmatprep.mubr.f32.mxu0 %v2861_v1  ;;  %479 = vmatprep.mubr.f32.mxu1 %v2861_v1  ;;  %v259_v4 = vcombine.high %v59_v2, %v59_v2  ;;  %v260_v5 = vcombine.high %v60_v3, %v60_v3  ;;  %v61_v6 = vld [vmem:[#allocation3 + $0x10] sm:$0xff]  ;;  %v62_v7 = vld [vmem:[#allocation3 + $0x18] sm:$0xff]  ;;  %vm275_vm1 = vcmask 31744   ;;  %v63_v11 = vld [vmem:[#allocation3 + $0x20] sm:$0xff]  ;;  %v2862_v38 = vmov 0  }
  0x3a   :  { %v2938_v8 = vld [vmem:[%s3109_s0] sm:$0xff]  ;;  %v261_v9 = vcombine.high %v61_v6, %v61_v6  ;;  %v262_v10 = vcombine.high %v62_v7, %v62_v7  ;;  %v64_v12 = vld [vmem:[#allocation3 + $0x28] sm:$0xff]  ;;  %v263_v13 = vcombine.high %v63_v11, %v63_v11  ;;  %v65_v15 = vld [vmem:[#allocation3 + $0x30] sm:$0xff]  ;;  %2747 = vset.pattern.permute.xlu0 %v2862_v38  ;;  %v84_v40 = vshrl.u32 %v83_v39, 7  ;;  %s2863_s0 = smov [#allocation9]  }
  0x3b   :  { %2693 = vmatprep.subr.msk.mxu0 %vm279_vm0, %v259_v4  ;;  %2696 = vmatprep.subr.msk.mxu1 %vm279_vm0, %v260_v5  ;;  %v264_v14 = vcombine.high %v64_v12, %v64_v12  ;;  %v66_v16 = vld [vmem:[#allocation3 + $0x38] sm:$0xff]  ;;  %v265_v17 = vcombine.high %v65_v15, %v65_v15  ;;  %v67_v19 = vld [vmem:[#allocation3 + $0x40] sm:$0xff]  ;;  %v68_v20 = vld [vmem:[#allocation3 + $0x48] sm:$0xff]  ;;  %s2683_s3 = sshll.u32 %s2863_s0, 4  ;;  %vm2675_vm2 = vcmask 57344   ;;  %s2684_s3 = int_to_ptr.vmem [resolvable:$true] %s2683_s3 }
  0x3c   :  { %2694 = vmatpush1.msk.msra.mxu0 %vm279_vm0, %v59_v2  ;;  %2697 = vmatpush1.msk.msra.mxu1 %vm279_vm0, %v60_v3  ;;  %v266_v18 = vcombine.high %v66_v16, %v66_v16  ;;  %v267_v21 = vcombine.high %v67_v19, %v67_v19  ;;  %v268_v22 = vcombine.high %v68_v20, %v68_v20  ;;  %v69_v23 = vld [vmem:[#allocation3 + $0x50] sm:$0xff]  ;;  %v70_v24 = vld [vmem:[#allocation3 + $0x58] sm:$0xff]  ;;  %v71_v27 = vld [vmem:[#allocation3 + $0x60] sm:$0xff]  ;;  %v3018_v41 = vsub.s32 0, %v84_v40  ;;  %s2830_s4 = scalar_lea.vmem %s2684_s3, 16  ;;  %s2834_s30 = scalar_lea.vmem %s2684_s3, 32 }
  0x3d   :  { %2695 = vmatmul.mubr.msk.f32.vlgmr.msra.gmra.mrb[0].mxu0 %vm275_vm1, %v2938_v8  ;;  %2698 = vmatmul.mubr.msk.f32.vlgmr.msra.gmra.mrb[0].mxu1 %vm275_vm1, %v2938_v8  ;;  %v269_v25 = vcombine.high %v69_v23, %v69_v23  ;;  %v270_v26 = vcombine.high %v70_v24, %v70_v24  ;;  %v72_v28 = vld [vmem:[#allocation3 + $0x68] sm:$0xff]  ;;  %v271_v29 = vcombine.high %v71_v27, %v71_v27  ;;  %v73_v31 = vld [vmem:[#allocation3 + $0x70] sm:$0xff]  ;;  %v74_v32 = vld [vmem:[#allocation3 + $0x78] sm:$0xff]  ;;  %v3020_v42 = vsub.s32 2, %v84_v40  ;;  %p2831_p10 = scmp.ne.s32.totalorder %s2684_s3, %s2830_s4  ;;  %p2835_p11 = scmp.lt.s32.totalorder %s2684_s3, %s2684_s3 }
  0x3e   :  { %2699 = vmatprep.subr.msk.mxu0 %vm279_vm0, %v261_v9  ;;  %2702 = vmatprep.subr.msk.mxu1 %vm279_vm0, %v262_v10  ;;  %v272_v30 = vcombine.high %v72_v28, %v72_v28  ;;  %v273_v33 = vcombine.high %v73_v31, %v73_v31  ;;  %v274_v34 = vcombine.high %v74_v32, %v74_v32  ;;  %v1513_v35 = vld [vmem:[#allocation8 + $0x8] sm:$0xff]  ;;  %v1515_v36 = vld [vmem:[#allocation8 + $0x18] sm:$0xff]  ;;  %v75_v43 = vld [vmem:[#allocation6] sm:$0xff]  ;;  %v3022_v44 = vsub.s32 1, %v84_v40  ;;  %p2836_p12 = scmp.lt.s32.totalorder %s2834_s30, %s2830_s4 }
  0x3f   :  { %2700 = vmatpush1.msk.msra.mxu0 %vm279_vm0, %v61_v6  ;;  %550 = vmatprep.mubr.f32.mxu0 %v2861_v1  ;;  %v2664_v37 = vld [vmem:[#allocation2] sm:$0x1]  ;;  %v3024_v45 = vsub.s32 3, %v84_v40  ;;  %v86_v46 = vrot.slane %v75_v43, %v3018_v41  ;;  %v94_v47 = vrot.slane %v75_v43, %v3020_v42  ;;  %v3028_v48 = vsub.s32 4, %v84_v40  ;;  %v3040_v62 = vld [vmem:[#allocation6 + $0x8] sm:$0xff] }
  0x40   :  { %2703 = vmatpush1.msk.msra.mxu1 %vm279_vm0, %v62_v7  ;;  %621 = vmatprep.mubr.f32.mxu1 %v2861_v1  ;;  %v3030_v49 = vsub.s32 6, %v84_v40  ;;  %v90_v50 = vrot.slane %v75_v43, %v3022_v44  ;;  %v3034_v52 = vsub.s32 5, %v84_v40  ;;  %v3036_v53 = vsub.s32 7, %v84_v40  ;;  %v1517_v38 = vld [vmem:[#allocation8 + $0x28] sm:$0xff]  ;;  %v1519_v39 = vld [vmem:[#allocation8 + $0x38] sm:$0xff]  ;;  %v1516_v40 = vld [vmem:[#allocation8 + $0x20] sm:$0xff]  ;;  %p2837_p13 = por %p2836_p12, %p2835_p11 }
  0x41   :  { %2701 = vmatmul.mubr.msk.f32.vlgmr.msra.gmra.mrb[2].mxu0 %vm275_vm1, %v2938_v8  ;;  %2704 = vmatmul.mubr.msk.f32.vlgmr.msra.gmra.mrb[2].mxu1 %vm275_vm1, %v2938_v8  ;;  %v98_v51 = vrot.slane %v75_v43, %v3024_v45  ;;  %v102_v60 = vrot.slane %v75_v43, %v3028_v48  ;;  %v122_v9 = vrot.slane %v3040_v62, %v3022_v44 }
  0x42   :  { %2705 = vmatprep.subr.msk.mxu0 %vm279_vm0, %v263_v13  ;;  %2708 = vmatprep.subr.msk.mxu1 %vm279_vm0, %v264_v14  ;;  %v110_v61 = vrot.slane %v75_v43, %v3030_v49  ;;  %v114_v2 = vrot.slane %v75_v43, %v3036_v53  ;;  %v126_v14 = vrot.slane %v3040_v62, %v3020_v42  ;;  %p2838_p0 = pnand %p2837_p13, %p2831_p10 }
  0x43   :  { %2706 = vmatpush1.msk.msra.mxu0 %vm279_vm0, %v63_v11  ;;  %692 = vmatprep.mubr.f32.mxu0 %v2861_v1 }
  0x44   :  { %2709 = vmatpush1.msk.msra.mxu1 %vm279_vm0, %v64_v12  ;;  %763 = vmatprep.mubr.f32.mxu1 %v2861_v1 }
  0x45   :  { %2707 = vmatmul.mubr.msk.f32.vlgmr.msra.gmra.mrb[4].mxu0 %vm275_vm1, %v2938_v8  ;;  %2710 = vmatmul.mubr.msk.f32.vlgmr.msra.gmra.mrb[4].mxu1 %vm275_vm1, %v2938_v8 }
  0x46   :  { %2711 = vmatprep.subr.msk.mxu0 %vm279_vm0, %v265_v17  ;;  %2714 = vmatprep.subr.msk.mxu1 %vm279_vm0, %v266_v18 }
  0x47   :  { %2712 = vmatpush1.msk.msra.mxu0 %vm279_vm0, %v65_v15  ;;  %834 = vmatprep.mubr.f32.mxu0 %v2861_v1  ;;  %v130_v15 = vrot.slane %v3040_v62, %v3024_v45 }
  0x48   :  { %2715 = vmatpush1.msk.msra.mxu1 %vm279_vm0, %v66_v16  ;;  %905 = vmatprep.mubr.f32.mxu1 %v2861_v1 }
  0x49   :  { %2713 = vmatmul.mubr.msk.f32.vlgmr.msra.gmra.mrb[6].mxu0 %vm275_vm1, %v2938_v8  ;;  %2716 = vmatmul.mubr.msk.f32.vlgmr.msra.gmra.mrb[6].mxu1 %vm275_vm1, %v2938_v8 }
  0x4a   :  { %2717 = vmatprep.subr.msk.mxu0 %vm279_vm0, %v267_v21  ;;  %2720 = vmatprep.subr.msk.mxu1 %vm279_vm0, %v268_v22 }
  0x4b   :  { %2718 = vmatpush1.msk.msra.mxu0 %vm279_vm0, %v67_v19  ;;  %976 = vmatprep.mubr.f32.mxu0 %v2861_v1  ;;  %v1512_v19 = vld [vmem:[#allocation8] sm:$0xff] }
  0x4c   :  { %2721 = vmatpush1.msk.msra.mxu1 %vm279_vm0, %v68_v20  ;;  %1047 = vmatprep.mubr.f32.mxu1 %v2861_v1  ;;  %v1514_v20 = vld [vmem:[#allocation8 + $0x10] sm:$0xff] }
  0x4d   :  { %2719 = vmatmul.mubr.msk.f32.vlgmr.msra.gmra.mrb[8].mxu0 %vm275_vm1, %v2938_v8  ;;  %2722 = vmatmul.mubr.msk.f32.vlgmr.msra.gmra.mrb[8].mxu1 %vm275_vm1, %v2938_v8 }
  0x4e   :  { %2723 = vmatprep.subr.msk.mxu0 %vm279_vm0, %v269_v25  ;;  %2726 = vmatprep.subr.msk.mxu1 %vm279_vm0, %v270_v26  ;;  %v134_v26 = vrot.slane %v3040_v62, %v3028_v48 }
  0x4f   :  { %2724 = vmatpush1.msk.msra.mxu0 %vm279_vm0, %v69_v23  ;;  %1118 = vmatprep.mubr.f32.mxu0 %v2861_v1 }
  0x50   :  { %2727 = vmatpush1.msk.msra.mxu1 %vm279_vm0, %v70_v24  ;;  %1189 = vmatprep.mubr.f32.mxu1 %v2861_v1 }
  0x51   :  { %2725 = vmatmul.mubr.msk.f32.vlgmr.msra.gmra.mrb[10].mxu0 %vm275_vm1, %v2938_v8  ;;  %2728 = vmatmul.mubr.msk.f32.vlgmr.msra.gmra.mrb[10].mxu1 %vm275_vm1, %v2938_v8 }
  0x52   :  { %2729 = vmatprep.subr.msk.mxu0 %vm279_vm0, %v271_v29  ;;  %2732 = vmatprep.subr.msk.mxu1 %vm279_vm0, %v272_v30 }
  0x53   :  { %2730 = vmatpush1.msk.msra.mxu0 %vm279_vm0, %v71_v27  ;;  %1260 = vmatprep.mubr.f32.mxu0 %v2861_v1  ;;  %v3054_v27 = vld [vmem:[#allocation6 + $0x10] sm:$0xff] }
  0x54   :  { %2733 = vmatpush1.msk.msra.mxu1 %vm279_vm0, %v72_v28  ;;  %1331 = vmatprep.mubr.f32.mxu1 %v2861_v1 }
  0x55   :  { %2731 = vmatmul.mubr.msk.f32.vlgmr.msra.gmra.mrb[12].mxu0 %vm275_vm1, %v2938_v8  ;;  %2734 = vmatmul.mubr.msk.f32.vlgmr.msra.gmra.mrb[12].mxu1 %vm275_vm1, %v2938_v8 }
  0x56   :  { %2735 = vmatprep.subr.msk.mxu0 %vm279_vm0, %v273_v33  ;;  %2738 = vmatprep.subr.msk.mxu1 %vm279_vm0, %v274_v34  ;;  %v146_v33 = vrot.slane %v3040_v62, %v3036_v53 }
  0x57   :  { %2736 = vmatpush1.msk.msra.mxu0 %vm279_vm0, %v73_v31  ;;  %1402 = vmatprep.mubr.f32.mxu0 %v2861_v1  ;;  %v142_v31 = vrot.slane %v3040_v62, %v3030_v49 }
  0x58   :  { %2739 = vmatpush1.msk.msra.mxu1 %vm279_vm0, %v74_v32  ;;  %1473 = vmatprep.mubr.f32.mxu1 %v2861_v1  ;;  %v106_v1 = vrot.slane %v75_v43, %v3034_v52  ;;  %v138_v32 = vrot.slane %v3040_v62, %v3034_v52  ;;  %v150_v43 = vrot.slane %v3054_v27, %v3018_v41 }
  0x59   :  { %2737 = vmatmul.mubr.msk.f32.vlgmr.msra.gmra.mrb[14].mxu0 %vm275_vm1, %v2938_v8  ;;  %2740 = vmatmul.mubr.msk.f32.vlgmr.msra.gmra.mrb[14].mxu1 %vm275_vm1, %v2938_v8  ;;  %v118_v8 = vrot.slane %v3040_v62, %v3018_v41 }
  0x5a   :  { %1608 = vmatprep.mubr.f32.mxu0 %v1513_v35  ;;  %1678 = vmatprep.mubr.f32.mxu1 %v1515_v36 }
  0x5b   :  { %2667 = vperm.xlu0 %2747, %v2664_v37  }
 0x110   :  { %v410_v54 = vpop.f32.mrb[0].mxu0  ;;  %v481_v55 = vpop.f32.mrb[0].mxu1 }
 0x111   :  { %v411_v56 = vadd.f32 %v410_v54, %v86_v46  ;;  %v482_v57 = vadd.f32 %v481_v55, %v94_v47  ;;  %v412_v58 = vpop.f32.mrb[1].mxu0  ;;  %v483_v59 = vpop.f32.mrb[1].mxu1  ;;  %v1518_v55 = vld [vmem:[#allocation8 + $0x30] sm:$0xff] }
 0x112   :  { %v413_v63 = vadd.f32 %v412_v58, %v90_v50  ;;  %v484_v0 = vadd.f32 %v483_v59, %v98_v51 }
 0x113   :  { %v1482_v3 = vmax.f32 %v482_v57, 0.0  ;;  %v1480_v10 = vmax.f32 %v411_v56, 0.0  ;;  %v154_v56 = vrot.slane %v3054_v27, %v3022_v44 }
 0x114   :  { %v1481_v4 = vmax.f32 %v413_v63, 0.0  ;;  %v1483_v5 = vmax.f32 %v484_v0, 0.0  ;;  %v552_v6 = vpop.f32.mrb[2].mxu0  ;;  %v623_v7 = vpop.f32.mrb[2].mxu1 }
 0x115   :  { %v624_v11 = vadd.f32 %v623_v7, %v110_v61  ;;  %v554_v12 = vpop.f32.mrb[3].mxu0  ;;  %v625_v13 = vpop.f32.mrb[3].mxu1  ;;  %v553_v16 = vadd.f32 %v552_v6, %v102_v60  ;;  %v158_v60 = vrot.slane %v3054_v27, %v3020_v42  ;;  %v162_v61 = vrot.slane %v3054_v27, %v3024_v45 }
 0x116   :  { %v555_v17 = vadd.f32 %v554_v12, %v106_v1  ;;  %v626_v18 = vadd.f32 %v625_v13, %v114_v2  ;;  %1544 = vmatprep.subr.mxu0 %v1481_v4  ;;  %1614 = vmatprep.subr.mxu1 %v1483_v5  ;;  %v1521_v2 = vld [vmem:[#allocation8 + $0x48] sm:$0xff]  ;;  %v1520_v4 = vld [vmem:[#allocation8 + $0x40] sm:$0xff]  ;;  %v1522_v5 = vld [vmem:[#allocation8 + $0x50] sm:$0xff]  ;;  %v166_v6 = vrot.slane %v3054_v27, %v3028_v48 }
 0x117   :  { %1545 = vmatpush1.xpose.msra.mxu0 %v1480_v10  ;;  %1615 = vmatpush1.xpose.msra.mxu1 %v1482_v3  ;;  %v1486_v21 = vmax.f32 %v624_v11, 0.0  ;;  %v1484_v34 = vmax.f32 %v553_v16, 0.0  ;;  %v1523_v3 = vld [vmem:[#allocation8 + $0x58] sm:$0xff]  ;;  %v170_v12 = vrot.slane %v3054_v27, %v3034_v52 }
 0x118   :  { %v1485_v22 = vmax.f32 %v555_v17, 0.0  ;;  %v1487_v23 = vmax.f32 %v626_v18, 0.0  ;;  %v694_v24 = vpop.f32.mrb[4].mxu0  ;;  %v765_v25 = vpop.f32.mrb[4].mxu1  ;;  %v3074_v13 = vld [vmem:[#allocation6 + $0x18] sm:$0xff]  ;;  %v174_v17 = vrot.slane %v3054_v27, %v3030_v49  ;;  %v178_v18 = vrot.slane %v3054_v27, %v3036_v53 }
 0x119   :  { %v766_v28 = vadd.f32 %v765_v25, %v126_v14  ;;  %v696_v29 = vpop.f32.mrb[5].mxu0  ;;  %v767_v30 = vpop.f32.mrb[5].mxu1  ;;  %v695_v35 = vadd.f32 %v694_v24, %v118_v8  ;;  %v1527_v24 = vld [vmem:[#allocation8 + $0x78] sm:$0xff]  ;;  %v1524_v25 = vld [vmem:[#allocation8 + $0x60] sm:$0xff] }
 0x11a   :  { %v697_v36 = vadd.f32 %v696_v29, %v122_v9  ;;  %v768_v37 = vadd.f32 %v767_v30, %v130_v15  ;;  %1609 = vmatmul.mubr.f32.vlgmr.msra.gmra.mrb[16].mxu0 %v1512_v19  ;;  %1684 = vmatprep.subr.mxu0 %v1485_v22 }
 0x11b   :  { %1754 = vmatprep.subr.mxu1 %v1487_v23  ;;  %1679 = vmatmul.mubr.f32.vlgmr.msra.gmra.mrb[16].mxu1 %v1514_v20  ;;  %v1490_v46 = vmax.f32 %v766_v28, 0.0  ;;  %v1488_v62 = vmax.f32 %v695_v35, 0.0  ;;  %v1525_v23 = vld [vmem:[#allocation8 + $0x68] sm:$0xff] }
 0x11c   :  { %v1489_v47 = vmax.f32 %v697_v36, 0.0  ;;  %v1491_v50 = vmax.f32 %v768_v37, 0.0  ;;  %1685 = vmatpush1.xpose.msra.mxu0 %v1484_v34  ;;  %1755 = vmatpush1.xpose.msra.mxu1 %v1486_v21  ;;  %v836_v51 = vpop.f32.mrb[6].mxu0  ;;  %v907_v54 = vpop.f32.mrb[6].mxu1  ;;  %v190_v37 = vrot.slane %v3074_v13, %v3020_v42 }
 0x11d   :  { %v908_v57 = vadd.f32 %v907_v54, %v142_v31  ;;  %v838_v58 = vpop.f32.mrb[7].mxu0  ;;  %v909_v59 = vpop.f32.mrb[7].mxu1  ;;  %1748 = vmatprep.mubr.f32.mxu0 %v1517_v38  ;;  %1818 = vmatprep.mubr.f32.mxu1 %v1519_v39  ;;  %v837_v63 = vadd.f32 %v836_v51, %v134_v26  ;;  %v182_v26 = vrot.slane %v3074_v13, %v3018_v41 }
 0x11e   :  { %v839_v0 = vadd.f32 %v838_v58, %v138_v32  ;;  %v910_v1 = vadd.f32 %v909_v59, %v146_v33  ;;  %1824 = vmatprep.subr.mxu0 %v1489_v47  ;;  %1894 = vmatprep.subr.mxu1 %v1491_v50  ;;  %v1526_v32 = vld [vmem:[#allocation8 + $0x70] sm:$0xff]  ;;  %v186_v33 = vrot.slane %v3074_v13, %v3022_v44  ;;  %v1529_v47 = vld [vmem:[#allocation8 + $0x88] sm:$0xff]  ;;  %v1531_v50 = vld [vmem:[#allocation8 + $0x98] sm:$0xff] }
 0x11f   :  { %1749 = vmatmul.mubr.f32.vlgmr.msra.gmra.mrb[18].mxu0 %v1516_v40  ;;  %1819 = vmatmul.mubr.f32.vlgmr.msra.gmra.mrb[18].mxu1 %v1518_v55  ;;  %v1494_v7 = vmax.f32 %v908_v57, 0.0  ;;  %v1492_v19 = vmax.f32 %v837_v63, 0.0  ;;  %v194_v38 = vrot.slane %v3074_v13, %v3024_v45  ;;  %v1528_v44 = vld [vmem:[#allocation8 + $0x80] sm:$0xff]  ;;  %v198_v51 = vrot.slane %v3074_v13, %v3028_v48  ;;  %v1530_v57 = vld [vmem:[#allocation8 + $0x90] sm:$0xff] }
 0x120   :  { %v1493_v8 = vmax.f32 %v839_v0, 0.0  ;;  %v1495_v9 = vmax.f32 %v910_v1, 0.0  ;;  %1825 = vmatpush1.xpose.msra.mxu0 %v1488_v62  ;;  %1895 = vmatpush1.xpose.msra.mxu1 %v1490_v46  ;;  %v978_v10 = vpop.f32.mrb[8].mxu0  ;;  %v1049_v11 = vpop.f32.mrb[8].mxu1  ;;  %v202_v58 = vrot.slane %v3074_v13, %v3034_v52  ;;  %v206_v62 = vrot.slane %v3074_v13, %v3030_v49  ;;  %v1532_v52 = vld [vmem:[#allocation8 + $0xa0] sm:$0xff] }
 0x121   :  { %v1050_v14 = vadd.f32 %v1049_v11, %v158_v60  ;;  %v980_v15 = vpop.f32.mrb[9].mxu0  ;;  %v1051_v16 = vpop.f32.mrb[9].mxu1  ;;  %1888 = vmatprep.mubr.f32.mxu0 %v1521_v2  ;;  %1958 = vmatprep.mubr.f32.mxu1 %v1523_v3  ;;  %v979_v20 = vadd.f32 %v978_v10, %v150_v43  ;;  %v210_v48 = vrot.slane %v3074_v13, %v3036_v53  ;;  %v1533_v3 = vld [vmem:[#allocation8 + $0xa8] sm:$0xff] }
 0x122   :  { %v981_v21 = vadd.f32 %v980_v15, %v154_v56  ;;  %v1052_v22 = vadd.f32 %v1051_v16, %v162_v61  ;;  %1964 = vmatprep.subr.mxu0 %v1493_v8  ;;  %2034 = vmatprep.subr.mxu1 %v1495_v9  ;;  %v1534_v9 = vld [vmem:[#allocation8 + $0xb0] sm:$0xff]  ;;  %v1537_v16 = vld [vmem:[#allocation8 + $0xc8] sm:$0xff] }
 0x123   :  { %1889 = vmatmul.mubr.f32.vlgmr.msra.gmra.mrb[20].mxu0 %v1520_v4  ;;  %1959 = vmatmul.mubr.f32.vlgmr.msra.gmra.mrb[20].mxu1 %v1522_v5  ;;  %v1498_v28 = vmax.f32 %v1050_v14, 0.0  ;;  %v1496_v39 = vmax.f32 %v979_v20, 0.0  ;;  %v1535_v4 = vld [vmem:[#allocation8 + $0xb8] sm:$0xff] }
 0x124   :  { %v1497_v29 = vmax.f32 %v981_v21, 0.0  ;;  %v1499_v30 = vmax.f32 %v1052_v22, 0.0  ;;  %1965 = vmatpush1.xpose.msra.mxu0 %v1492_v19  ;;  %2035 = vmatpush1.xpose.msra.mxu1 %v1494_v7  ;;  %v1120_v27 = vpop.f32.mrb[10].mxu0  ;;  %v1191_v31 = vpop.f32.mrb[10].mxu1  ;;  %v1536_v21 = vld [vmem:[#allocation8 + $0xc0] sm:$0xff]  ;;  %v1538_v22 = vld [vmem:[#allocation8 + $0xd0] sm:$0xff] }
 0x125   :  { %v1192_v34 = vadd.f32 %v1191_v31, %v174_v17  ;;  %v1122_v35 = vpop.f32.mrb[11].mxu0  ;;  %v1193_v36 = vpop.f32.mrb[11].mxu1  ;;  %2028 = vmatprep.mubr.f32.mxu0 %v1525_v23  ;;  %2098 = vmatprep.mubr.f32.mxu1 %v1527_v24  ;;  %v1121_v40 = vadd.f32 %v1120_v27, %v166_v6  ;;  %v1539_v17 = vld [vmem:[#allocation8 + $0xd8] sm:$0xff]  ;;  %v1541_v24 = vld [vmem:[#allocation8 + $0xe8] sm:$0xff] }
 0x126   :  { %v1123_v43 = vadd.f32 %v1122_v35, %v170_v12  ;;  %v1194_v46 = vadd.f32 %v1193_v36, %v178_v18  ;;  %2104 = vmatprep.subr.mxu0 %v1497_v29  ;;  %2174 = vmatprep.subr.mxu1 %v1499_v30 }
 0x127   :  { %2029 = vmatmul.mubr.f32.vlgmr.msra.gmra.mrb[22].mxu0 %v1524_v25  ;;  %2099 = vmatmul.mubr.f32.vlgmr.msra.gmra.mrb[22].mxu1 %v1526_v32  ;;  %v1502_v54 = vmax.f32 %v1192_v34, 0.0  ;;  %v1500_v63 = vmax.f32 %v1121_v40, 0.0  ;;  %v1543_v25 = vld [vmem:[#allocation8 + $0xf8] sm:$0xff] }
 0x128   :  { %v1501_v55 = vmax.f32 %v1123_v43, 0.0  ;;  %v1503_v42 = vmax.f32 %v1194_v46, 0.0  ;;  %2105 = vmatpush1.xpose.msra.mxu0 %v1496_v39  ;;  %2175 = vmatpush1.xpose.msra.mxu1 %v1498_v28  ;;  %v1262_v45 = vpop.f32.mrb[12].mxu0  ;;  %v1333_v56 = vpop.f32.mrb[12].mxu1  ;;  %v1542_v28 = vld [vmem:[#allocation8 + $0xf0] sm:$0xff] }
 0x129   :  { %v1334_v59 = vadd.f32 %v1333_v56, %v190_v37  ;;  %v1264_v60 = vpop.f32.mrb[13].mxu0  ;;  %v1335_v61 = vpop.f32.mrb[13].mxu1  ;;  %2168 = vmatprep.mubr.f32.mxu0 %v1529_v47  ;;  %2238 = vmatprep.mubr.f32.mxu1 %v1531_v50  ;;  %v1263_v0 = vadd.f32 %v1262_v45, %v182_v26  ;;  %v1540_v26 = vld [vmem:[#allocation8 + $0xe0] sm:$0xff] }
 0x12a   :  { %v1265_v1 = vadd.f32 %v1264_v60, %v186_v33  ;;  %v1336_v2 = vadd.f32 %v1335_v61, %v194_v38  ;;  %2244 = vmatprep.subr.mxu0 %v1501_v55  ;;  %2314 = vmatprep.subr.mxu1 %v1503_v42 }
 0x12b   :  { %2169 = vmatmul.mubr.f32.vlgmr.msra.gmra.mrb[24].mxu0 %v1528_v44  ;;  %2239 = vmatmul.mubr.f32.vlgmr.msra.gmra.mrb[24].mxu1 %v1530_v57  ;;  %v1506_v5 = vmax.f32 %v1334_v59, 0.0  ;;  %v1504_v12 = vmax.f32 %v1263_v0, 0.0 }
 0x12c   :  { %v1505_v6 = vmax.f32 %v1265_v1, 0.0  ;;  %v1507_v7 = vmax.f32 %v1336_v2, 0.0  ;;  %2245 = vmatpush1.xpose.msra.mxu0 %v1500_v63  ;;  %2315 = vmatpush1.xpose.msra.mxu1 %v1502_v54  ;;  %v1404_v49 = vpop.f32.mrb[14].mxu0  ;;  %v1475_v8 = vpop.f32.mrb[14].mxu1 }
 0x12d   :  { %v1476_v53 = vadd.f32 %v1475_v8, %v206_v62  ;;  %v1406_v10 = vpop.f32.mrb[15].mxu0  ;;  %v1477_v11 = vpop.f32.mrb[15].mxu1  ;;  %2308 = vmatprep.mubr.f32.mxu0 %v1533_v3  ;;  %2378 = vmatprep.mubr.f32.mxu1 %v1535_v4  ;;  %v1405_v13 = vadd.f32 %v1404_v49, %v198_v51 }
 0x12e   :  { %v1407_v14 = vadd.f32 %v1406_v10, %v202_v58  ;;  %v1478_v15 = vadd.f32 %v1477_v11, %v210_v48  ;;  %2384 = vmatprep.subr.mxu0 %v1505_v6  ;;  %2454 = vmatprep.subr.mxu1 %v1507_v7  ;;  %v2668_v7 = vpop.permute.xlu0 %2667 }
 0x12f   :  { %2309 = vmatmul.mubr.f32.vlgmr.msra.gmra.mrb[26].mxu0 %v1532_v52  ;;  %2379 = vmatmul.mubr.f32.vlgmr.msra.gmra.mrb[26].mxu1 %v1534_v9  ;;  %v1510_v18 = vmax.f32 %v1476_v53, 0.0  ;;  %v1508_v23 = vmax.f32 %v1405_v13, 0.0  ;;  %v2673_v11 = vrot.slane %v2668_v7, %v3018_v41 }
 0x130   :  { %v1509_v19 = vmax.f32 %v1407_v14, 0.0  ;;  %v1511_v20 = vmax.f32 %v1478_v15, 0.0  ;;  %2385 = vmatpush1.xpose.msra.mxu0 %v1504_v12  ;;  %2455 = vmatpush1.xpose.msra.mxu1 %v1506_v5 }
 0x131   :  { %2448 = vmatprep.mubr.f32.mxu0 %v1537_v16  ;;  %2518 = vmatprep.mubr.f32.mxu1 %v1539_v17 }
 0x132   :  { %2524 = vmatprep.subr.mxu0 %v1509_v19  ;;  %2594 = vmatprep.subr.mxu1 %v1511_v20 }
 0x133   :  { %2449 = vmatmul.mubr.f32.vlgmr.msra.gmra.mrb[28].mxu0 %v1536_v21  ;;  %2519 = vmatmul.mubr.f32.vlgmr.msra.gmra.mrb[28].mxu1 %v1538_v22 }
 0x134   :  { %2525 = vmatpush1.xpose.msra.mxu0 %v1508_v23  ;;  %2595 = vmatpush1.xpose.msra.mxu1 %v1510_v18 }
 0x135   :  { %2588 = vmatprep.mubr.f32.mxu0 %v1541_v24  ;;  %2658 = vmatprep.mubr.f32.mxu1 %v1543_v25 }
 0x137   :  { %2589 = vmatmul.mubr.f32.vlgmr.msra.gmra.mrb[30].mxu0 %v1540_v26  ;;  %2659 = vmatmul.mubr.f32.vlgmr.msra.gmra.mrb[30].mxu1 %v1542_v28 }
 0x1ed   :  { %v1610_v29 = vpop.f32.mrb[16].mxu0 }
 0x1ee   :  { %v1612_v30 = vpop.f32.mrb[17].mxu0  ;;  %v1680_v27 = vpop.f32.mrb[16].mxu1 }
 0x1ef   :  { %v1681_v31 = vadd.f32 %v1680_v27, %v1610_v29  ;;  %v1682_v32 = vpop.f32.mrb[17].mxu1 }
 0x1f2   :  { %v1750_v33 = vpop.f32.mrb[18].mxu0  ;;  %v1820_v34 = vpop.f32.mrb[18].mxu1 }
 0x1f3   :  { %v1751_v35 = vadd.f32 %v1750_v33, %v1681_v31  ;;  %v1752_v36 = vpop.f32.mrb[19].mxu0  ;;  %v1822_v37 = vpop.f32.mrb[19].mxu1 }
 0x1f5   :  { %v1821_v38 = vadd.f32 %v1820_v34, %v1751_v35 }
 0x1f6   :  { %v1890_v39 = vpop.f32.mrb[20].mxu0  ;;  %v1960_v40 = vpop.f32.mrb[20].mxu1 }
 0x1f7   :  { %v1891_v43 = vadd.f32 %v1890_v39, %v1821_v38  ;;  %v1892_v46 = vpop.f32.mrb[21].mxu0  ;;  %v1962_v47 = vpop.f32.mrb[21].mxu1 }
 0x1f9   :  { %v1961_v50 = vadd.f32 %v1960_v40, %v1891_v43 }
 0x1fa   :  { %v2030_v44 = vpop.f32.mrb[22].mxu0  ;;  %v2100_v51 = vpop.f32.mrb[22].mxu1 }
 0x1fb   :  { %v2031_v54 = vadd.f32 %v2030_v44, %v1961_v50  ;;  %v2032_v55 = vpop.f32.mrb[23].mxu0  ;;  %v2102_v42 = vpop.f32.mrb[23].mxu1 }
 0x1fd   :  { %v2101_v45 = vadd.f32 %v2100_v51, %v2031_v54 }
 0x1fe   :  { %v2170_v56 = vpop.f32.mrb[24].mxu0  ;;  %v2240_v57 = vpop.f32.mrb[24].mxu1 }
 0x1ff   :  { %v2171_v58 = vadd.f32 %v2170_v56, %v2101_v45  ;;  %v2172_v59 = vpop.f32.mrb[25].mxu0  ;;  %v2242_v60 = vpop.f32.mrb[25].mxu1 }
 0x201   :  { %v2241_v61 = vadd.f32 %v2240_v57, %v2171_v58 }
 0x202   :  { %v2310_v62 = vpop.f32.mrb[26].mxu0  ;;  %v2380_v48 = vpop.f32.mrb[26].mxu1 }
 0x203   :  { %v2311_v63 = vadd.f32 %v2310_v62, %v2241_v61  ;;  %v2312_v0 = vpop.f32.mrb[27].mxu0  ;;  %v2382_v1 = vpop.f32.mrb[27].mxu1 }
 0x205   :  { %v2381_v2 = vadd.f32 %v2380_v48, %v2311_v63 }
 0x206   :  { %v2450_v3 = vpop.f32.mrb[28].mxu0  ;;  %v2520_v4 = vpop.f32.mrb[28].mxu1 }
 0x207   :  { %v2451_v52 = vadd.f32 %v2450_v3, %v2381_v2  ;;  %v2452_v5 = vpop.f32.mrb[29].mxu0  ;;  %v2522_v6 = vpop.f32.mrb[29].mxu1 }
 0x209   :  { %v2521_v49 = vadd.f32 %v2520_v4, %v2451_v52 }
 0x20a   :  { %v2590_v8 = vpop.f32.mrb[30].mxu0  ;;  %v2660_v9 = vpop.f32.mrb[30].mxu1 }
 0x20b   :  { %v2591_v53 = vadd.f32 %v2590_v8, %v2521_v49  ;;  %v2592_v10 = vpop.f32.mrb[31].mxu0  ;;  %v2662_v12 = vpop.f32.mrb[31].mxu1 }
 0x20d   :  { %v2661_v13 = vadd.f32 %v2660_v9, %v2591_v53 }
 0x20f   :  { %v2674_v14 = vadd.f32 %v2673_v11, %v2661_v13 }
 0x211   :  { %2676 = vst.msk [vmem:[#allocation9] sm:$0x1] %vm2675_vm2, %v2674_v14 }
 0x212   :  { %2841 = shalt.err (!%p2838_p0)
}
 0x213   :  { %s2842_s8 = scalar_lea.hbm %s3114_s5, 16 }
 0x214   :  { %p2843_p1 = scmp.ne.s32.totalorder %s3114_s5, %s2842_s8  ;;  %p2846_p2 = scmp.lt.u32.totalorder %s2842_s8, %s3114_s5 }
 0x216   :  { %p2848_p3 = pnand %p2846_p2, %p2843_p1 }
 0x218   :  { %2851 = shalt.err (!%p2848_p3)
}
 0x219   :  { %2686 = dma.vmem_to_hbm [thread:$0]  %s2684_s3, 16, %s3114_s5, [#allocation5]  }
 0x21a   :  { %2856 = dma.done.wait [#allocation5], 16  }
 0x21b   :  { %2857 = vsyncadd [#allocation5], 4294967280 }
 0x21c   :  { %2690 = vsyncpa [#allocation4], 1 }
 0x21d   :  { %2691 = vsyncpa [#allocation7], 1 }
 0x21e   :  { %2692 = vsyncpa [#allocation5], 1 }

</bundles_post_ra>
